<compile_context>
chip_gen: v5e
topology: v5e:2x2
jax: 0.10.0
libtpu: 0.0.40
codegen_flags: <defaults>
</compile_context>

<pallas_src>
import jax
import jax.numpy as jnp
from jax.experimental import pallas as pl
from jax.experimental.pallas import tpu as pltpu


def _sa_convsp_kernel(x_ref, w_sa_ref, b_sa_ref, w_sp_ref, b_sp_ref, o_ref):
    """Per-tile fused SpatialAttention + 1x1 conv_sp.

    x_ref / o_ref : VMEM (C, T) tile (batch dim squeezed; channels on sublanes,
                    pixels on the 128-wide lane axis).
    w_sa_ref      : VMEM (1, C) SpatialAttention 1x1 conv weight (x dtype).
    b_sa_ref      : SMEM (1,)   SpatialAttention bias (f32 scalar).
    w_sp_ref      : VMEM (C, C) conv_sp 1x1 weight (x dtype).
    b_sp_ref      : VMEM (C, 1) conv_sp bias (f32).
    """
    x = x_ref[...]                                            # (C, T), native dtype
    # SA 1x1 conv over channels on the MXU: (1,C) @ (C,T) -> (1,T), f32 accumulation.
    logits = jnp.dot(w_sa_ref[...], x,
                     preferred_element_type=jnp.float32) + b_sa_ref[0]
    gate = jax.nn.sigmoid(logits)                             # exp on the EUP
    y = x * gate.astype(x.dtype)                              # gating stays in x dtype
    # Fused following 1x1 conv_sp on the MXU: (C,C) @ (C,T) -> (C,T), + per-channel bias.
    out = jnp.dot(w_sp_ref[...], y,
                  preferred_element_type=jnp.float32) + b_sp_ref[...]
    o_ref[...] = out.astype(o_ref.dtype)


def _pick_tile_hw(n_channels, n_pixels, itemsize, target_block_bytes,
                  min_spatial_tiles=1):
    """Largest lane-dense (multiple-of-128) spatial tile near target bytes/block.

    Optionally capped so the grid has >= min_spatial_tiles spatial steps (keeps both
    v7x TensorCores busy when the batch dim alone gives no parallelism).
    """
    t = (target_block_bytes // max(1, n_channels * itemsize)) // 128 * 128
    t = max(128, t)
    if min_spatial_tiles > 1 and n_pixels > 128:
        cap = max(128, (n_pixels // min_spatial_tiles) // 128 * 128)
        t = min(t, cap)
    if t >= n_pixels:
        return n_pixels        # whole spatial extent in one block (full-dim is legal)
    return t


def spatial_attention_conv_sp(x_nchw, sa_weight, sa_bias, sp_weight, sp_bias,
                              *, target_block_bytes=4 << 20):
    """Fused CAB tail: out = conv_sp(x * sigmoid(conv_sa(x))), both convs 1x1.

    x_nchw   : (B, C, H, W)
    sa_weight: (1, C, 1, 1), sa_bias: (1,)   -- SpatialAttention.conv
    sp_weight: (C, C, 1, 1), sp_bias: (C,)   -- CAB.conv_sp
    """
    B, C, H, W = x_nchw.shape
    HW = H * W
    itemsize = jnp.dtype(x_nchw.dtype).itemsize

    # Free, layout-preserving reshape: pixels on the lane axis, channels on sublanes.
    x_rows = x_nchw.reshape(B, C, HW)
    w_sa = sa_weight.reshape(1, C).astype(x_nchw.dtype)      # (1, C) -> VMEM
    b_sa = sa_bias.reshape(1).astype(jnp.float32)            # (1,)   -> SMEM
    w_sp = sp_weight.reshape(C, C).astype(x_nchw.dtype)      # (C, C) -> VMEM
    b_sp = sp_bias.reshape(C, 1).astype(jnp.float32)         # (C, 1) -> VMEM

    # Guarantee >=2 grid steps when B == 1 so both v7x TensorCores get work.
    min_spatial_tiles = 2 if B < 2 else 1
    tile_hw = _pick_tile_hw(C, HW, itemsize, target_block_bytes, min_spatial_tiles)
    grid = (B, pl.cdiv(HW, tile_hw))     # ragged last tile masked by Pallas

    block_bytes = C * tile_hw * itemsize
    # 2x-in + 2x-out double buffers + weights + margin; raised above v5e's 16 MiB
    # scoped default so ~4 MiB blocks are safe there, capped under v7x's 64 MiB VMEM.
    vmem_limit = int(min(48 << 20, max(16 << 20, 4 * block_bytes + (2 << 20))))

    n_pix = B * HW
    cost = pl.CostEstimate(
        flops=n_pix * (2 * C + C + 2 * C * C),      # SA conv + gate mul + conv_sp
        transcendentals=n_pix,                      # one exp per pixel
        bytes_accessed=2 * B * C * HW * itemsize,   # stream in + stream out (aliased)
    )

    out = pl.pallas_call(
        _sa_convsp_kernel,
        out_shape=jax.ShapeDtypeStruct((B, C, HW), x_nchw.dtype),
        grid=grid,
        in_specs=[
            pl.BlockSpec((pl.Squeezed(), C, tile_hw), lambda b, j: (b, 0, j)),  # x
            pl.BlockSpec((1, C), lambda b, j: (0, 0)),                          # w_sa
            pl.BlockSpec(memory_space=pltpu.MemorySpace.SMEM),                  # b_sa
            pl.BlockSpec((C, C), lambda b, j: (0, 0)),                          # w_sp
            pl.BlockSpec((C, 1), lambda b, j: (0, 0)),                          # b_sp
        ],
        out_specs=pl.BlockSpec((pl.Squeezed(), C, tile_hw), lambda b, j: (b, 0, j)),
        input_output_aliases={0: 0},   # write the gated+mixed result in place of x
        compiler_params=pltpu.CompilerParams(
            dimension_semantics=("parallel", "parallel"),
            vmem_limit_bytes=vmem_limit),
        cost_estimate=cost,
    )(x_rows, w_sa, b_sa, w_sp, b_sp)

    return out.reshape(B, C, H, W)


if __name__ == "__main__":
    key = jax.random.PRNGKey(0)

    def run_case(B, C, H, W, target_block_bytes):
        case_key = jax.random.fold_in(key, B * 10000 + C * 100 + H)
        kx, kw1, kb1, kw2, kb2 = jax.random.split(case_key, 5)
        x = jax.random.normal(kx, (B, C, H, W), dtype=jnp.float32)
        sa_w = jax.random.normal(kw1, (1, C, 1, 1), dtype=jnp.float32) * 0.5
        sa_b = jax.random.normal(kb1, (1,), dtype=jnp.float32) * 0.1
        sp_w = jax.random.normal(kw2, (C, C, 1, 1), dtype=jnp.float32) * 0.5
        sp_b = jax.random.normal(kb2, (C,), dtype=jnp.float32) * 0.1

        out = spatial_attention_conv_sp(x, sa_w, sa_b, sp_w, sp_b,
                                        target_block_bytes=target_block_bytes)
        out = jax.block_until_ready(out)

        # Pure-JAX reference of SpatialAttention -> conv_sp (PyTorch semantics).
        logits = jnp.einsum("bchw,oc->bohw", x, sa_w.reshape(1, C)) \
            + sa_b.reshape(1, 1, 1, 1)
        y = x * jax.nn.sigmoid(logits)
        ref = jnp.einsum("bihw,oi->bohw", y, sp_w.reshape(C, C)) \
            + sp_b.reshape(1, C, 1, 1)

        assert out.shape == (B, C, H, W)
        assert jnp.allclose(out, ref, atol=1e-3, rtol=1e-3), \
            f"max abs err {float(jnp.max(jnp.abs(out - ref)))}"

    # Small canonical shapes: one lane-dense tile per batch element (HW = 256).
    run_case(B=2, C=4, H=16, W=16, target_block_bytes=4 << 20)
    # Ragged last spatial tile (HW = 324 with 128-wide tiles) and B == 1, which forces
    # >= 2 spatial tiles so both v7x TensorCores get work.
    run_case(B=1, C=4, H=18, W=18, target_block_bytes=128 * 4 * 4)

    print("KERNEL_OK")
</pallas_src>

<mosaic_0001>
module attributes {stable_mosaic.version = 11 : i64} {
  func.func @_sa_convsp_kernel(%arg0: i32, %arg1: i32, %arg2: memref<1x4x256xf32, #tpu.memory_space<vmem>>, %arg3: memref<1x4xf32, #tpu.memory_space<vmem>>, %arg4: memref<1xf32, #tpu.memory_space<smem>>, %arg5: memref<4x4xf32, #tpu.memory_space<vmem>>, %arg6: memref<4x1xf32, #tpu.memory_space<vmem>>, %arg7: memref<1x4x256xf32, #tpu.memory_space<vmem>>) attributes {dimension_semantics = [#tpu.dimension_semantics<parallel>, #tpu.dimension_semantics<parallel>], iteration_bounds = array<i64: 2, 1>, scalar_prefetch = 0 : i64, scratch_operands = 0 : i64, tpu.core_type = #tpu.core_type<tc>, window_params = [{transform_indices = @transform_0, window_bounds = array<i64: 1, 4, 256>}, {pipeline_mode = #tpu.pipeline_mode<synchronous>, transform_indices = @transform_1, window_bounds = array<i64: 1, 4>}, {transform_indices = @transform_2, window_bounds = array<i64: 1>}, {pipeline_mode = #tpu.pipeline_mode<synchronous>, transform_indices = @transform_3, window_bounds = array<i64: 4, 4>}, {pipeline_mode = #tpu.pipeline_mode<synchronous>, transform_indices = @transform_4, window_bounds = array<i64: 4, 1>}, {transform_indices = @transform_5, window_bounds = array<i64: 1, 4, 256>}]} {
    %c0 = arith.constant 0 : index
    %c0_0 = arith.constant 0 : index
    %c0_1 = arith.constant 0 : index
    %0 = vector.load %arg2[%c0, %c0_0, %c0_1] : memref<1x4x256xf32, #tpu.memory_space<vmem>>, vector<1x4x256xf32>
    %1 = vector.shape_cast %0 : vector<1x4x256xf32> to vector<4x256xf32>
    %c0_2 = arith.constant 0 : index
    %c0_3 = arith.constant 0 : index
    %2 = vector.load %arg3[%c0_2, %c0_3] : memref<1x4xf32, #tpu.memory_space<vmem>>, vector<1x4xf32>
    %cst = arith.constant dense<0.000000e+00> : vector<1x256xf32>
    %3 = tpu.matmul %2, %1, %cst {dimension_numbers = #tpu.dot_dimension_numbers<[1], [0], [0], [1], [0, 0, 1, 1], [], []>} : vector<1x4xf32>, vector<4x256xf32>, vector<1x256xf32> -> vector<1x256xf32>
    %c0_4 = arith.constant 0 : index
    %4 = memref.load %arg4[%c0_4] : memref<1xf32, #tpu.memory_space<smem>>
    %5 = vector.broadcast %4 : f32 to vector<1x256xf32>
    %6 = arith.addf %3, %5 : vector<1x256xf32>
    %7 = arith.negf %6 : vector<1x256xf32>
    %8 = math.exp %7 : vector<1x256xf32>
    %cst_5 = arith.constant 1.000000e+00 : f32
    %9 = vector.broadcast %cst_5 : f32 to vector<1x256xf32>
    %10 = arith.addf %9, %8 : vector<1x256xf32>
    %11 = arith.divf %9, %10 : vector<1x256xf32>
    %12 = vector.broadcast %11 : vector<1x256xf32> to vector<4x256xf32>
    %13 = arith.mulf %1, %12 : vector<4x256xf32>
    %c0_6 = arith.constant 0 : index
    %c0_7 = arith.constant 0 : index
    %14 = vector.load %arg5[%c0_6, %c0_7] : memref<4x4xf32, #tpu.memory_space<vmem>>, vector<4x4xf32>
    %cst_8 = arith.constant dense<0.000000e+00> : vector<4x256xf32>
    %15 = tpu.matmul %14, %13, %cst_8 {dimension_numbers = #tpu.dot_dimension_numbers<[1], [0], [0], [1], [0, 0, 1, 1], [], []>} : vector<4x4xf32>, vector<4x256xf32>, vector<4x256xf32> -> vector<4x256xf32>
    %c0_9 = arith.constant 0 : index
    %c0_10 = arith.constant 0 : index
    %16 = vector.load %arg6[%c0_9, %c0_10] : memref<4x1xf32, #tpu.memory_space<vmem>>, vector<4x1xf32>
    %17 = vector.broadcast %16 : vector<4x1xf32> to vector<4x256xf32>
    %18 = arith.addf %15, %17 : vector<4x256xf32>
    %c0_11 = arith.constant 0 : index
    %c0_12 = arith.constant 0 : index
    %c0_13 = arith.constant 0 : index
    %19 = vector.load %arg7[%c0_11, %c0_12, %c0_13] : memref<1x4x256xf32, #tpu.memory_space<vmem>>, vector<1x4x256xf32>
    %20 = vector.shape_cast %19 : vector<1x4x256xf32> to vector<4x256xf32>
    %21 = vector.shape_cast %18 : vector<4x256xf32> to vector<1x4x256xf32>
    tpu.vector_store %arg7[%c0_11, %c0_12, %c0_13], %21 {strides = array<i32>} : memref<1x4x256xf32, #tpu.memory_space<vmem>>, vector<1x4x256xf32>,
    return
  }
  func.func @transform_0(%arg0: i32, %arg1: i32) -> (i32, i32, i32) {
    %c0_i32 = arith.constant 0 : i32
    %c0_i32_0 = arith.constant 0 : i32
    return %arg0, %c0_i32, %arg1 : i32, i32, i32
  }
  func.func @transform_1(%arg0: i32, %arg1: i32) -> (i32, i32) {
    %c0_i32 = arith.constant 0 : i32
    %c0_i32_0 = arith.constant 0 : i32
    %c0_i32_1 = arith.constant 0 : i32
    return %c0_i32, %c0_i32_0 : i32, i32
  }
  func.func @transform_2(%arg0: i32, %arg1: i32) -> i32 {
    %c0_i32 = arith.constant 0 : i32
    %c0_i32_0 = arith.constant 0 : i32
    return %c0_i32 : i32
  }
  func.func @transform_3(%arg0: i32, %arg1: i32) -> (i32, i32) {
    %c0_i32 = arith.constant 0 : i32
    %c0_i32_0 = arith.constant 0 : i32
    %c0_i32_1 = arith.constant 0 : i32
    return %c0_i32, %c0_i32_0 : i32, i32
  }
  func.func @transform_4(%arg0: i32, %arg1: i32) -> (i32, i32) {
    %c0_i32 = arith.constant 0 : i32
    %c0_i32_0 = arith.constant 0 : i32
    %c0_i32_1 = arith.constant 0 : i32
    return %c0_i32, %c0_i32_0 : i32, i32
  }
  func.func @transform_5(%arg0: i32, %arg1: i32) -> (i32, i32, i32) {
    %c0_i32 = arith.constant 0 : i32
    %c0_i32_0 = arith.constant 0 : i32
    return %arg0, %c0_i32, %arg1 : i32, i32, i32
  }
}

</mosaic_0001>

<bundles_post_ra>
// kernel: tpu_custom_call.1
= control target key start
LH: loop header
LB: loop body
LE: loop exit
PB: predicated region body
PF: predicated region fallthrough
CT: control target
= control target key end

     0   :  { %s928_s0 = inlined_call_operand.hbm [shape: f32[2,4,256], index: 0, kind: input, shape index: {}, may-alias: {0,5}]   ;;  %s929_s1 = inlined_call_operand.vmem [shape: f32[1,4], index: 1, kind: input, shape index: {}]   ;;  %s930_s2 = inlined_call_operand.<no memory space> [shape: f32[1], index: 2, kind: input, shape index: {}]   ;;  %s931_s3 = inlined_call_operand.vmem [shape: f32[4,4], index: 3, kind: input, shape index: {}]   ;;  %s932_s4 = inlined_call_operand.vmem [shape: f32[4,1], index: 4, kind: input, shape index: {}]   ;;  %s933_s5 = inlined_call_operand.hbm [shape: f32[2,4,256], index: 5, kind: output, shape index: {}, may-alias: {0,5}]  }
   0x1   :  { %10 = sst [smem:[#allocation2]] %s930_s2 }
   0x2   :  { %11 = vsyncpa [#allocation4], 0 }
   0x3   :  { %13 = vsyncpa [#allocation4 + $0x1], 0 }
   0x4   :  { %14 = vsyncpa [#allocation5], 0 }
   0x5   :  { %16 = vsyncpa [#allocation5 + $0x1], 0  ;;  %s781_s20 = smov 0   ;;  %s783_s21 = smov 0  }
   0x6   :  { %s785_s22 = smov 0   ;;  %s787_s23 = smov 0  }
   0x7   :  { %s789_s24 = smov 0   ;;  %s791_s25 = smov 0  }
   0x8 LB: > { %s534_s2 = sadd.s32 4294967295, %s745_s25   ;;  %s535_s26 = sadd.s32 4294967294, %s745_s25   ;;  %s745_s25 = sphi %s791_s25, %s22_s25   ;;  %s741_s24 = sphi %s789_s24, %s942_s24   ;;  %s737_s23 = sphi %s787_s23, %s941_s23   ;;  %s733_s22 = sphi %s785_s22, %s940_s22   ;;  %s729_s21 = sphi %s783_s21, %s939_s21   ;;  %s725_s20 = sphi %s781_s20, %s938_s20  }
   0x9   : > { %s34_s27 = sadd.s32 1, %s741_s24  ;;  %s43_s28 = sadd.s32 1, %s733_s22 }
   0xa   : > { %p36_p0 = scmp.ge.s32.totalorder %s34_s27, 2  ;;  %p50_p1 = scmp.ne.s32.totalorder %s733_s22, %s729_s21 }
   0xb   : > { %p51_p2 = scmp.eq.s32.totalorder %s745_s25, 0  ;;  %p56_p3 = scmp.ne.s32.totalorder %s729_s21, %s725_s20 }
   0xc   : > { %s944_s27 = smov (%p36_p0, %s34_s27), 0  ;;  %p57_p5 = scmp.eq.s32.totalorder %s534_s2, 0 }
   0xd   : > { %p822_p4 = por %p51_p2, %p50_p1  ;;  %s38_s30 = ssub.s32 %s741_s24, %s944_s27 }
   0xe   : > { %p166_p6 = scmp.eq.s32.totalorder %s534_s2, 1  ;;  %p41_p7 = scmp.eq.s32.totalorder %s38_s30, 0 }
   0xf   : > { %p828_p8 = por %p57_p5, %p56_p3  ;;  %p172_p10 = scmp.eq.s32.totalorder %s535_s26, 1 }
  0x10   : > { %p832_p9 = por %p166_p6, %p50_p1  ;;  %p537_p12 = scmp.ge.s32.totalorder %s745_s25, 2 }
  0x11   : > { %s837_s8 = scalar_select %p41_p7, %s733_s22, %s43_s28  }
  0x12   : > { %p839_p11 = por %p172_p10, %p56_p3  ;;  %p573_p13 = scmp.lt.s32.totalorder %s745_s25, 2 }
  0x13   : > { %s204_s10 = sand.u32 1, %s733_s22   ;;  %s559_s12 = sshll.u32 %s741_s24, 3 }
  0x14   : > { %s538_s11 = sshll.u32 %s204_s10, 3  ;;  %s215_s15 = scalar_lea.hbm %s928_s0, %s559_s12 }
  0x15   : > { %s208_s16 = scalar_lea.vmem [#allocation3], %s538_s11  ;;  %s217_s18 = sshll.u32 %s215_s15, 4  ;;  %s218_s18 = int_to_ptr.hbm [resolvable:$true] %s217_s18 }
  0x16   : > { %s219_s17 = sshll.u32 %s208_s16, 4  ;;  %p566_p0 = pnand %p573_p13, %p822_p4  ;;  %s220_s17 = int_to_ptr.vmem [resolvable:$true] %s219_s17 }
  0x17   : > { %p541_p1 = scmp.ge.s32.totalorder %s745_s25, 1  ;;  %p224_p2 = scmp.lt.s32.totalorder %s745_s25, 3 }
  0x18   : > { %s205_s19 = scalar_lea.sflag [#allocation4], %s204_s10 }
  0x19   : > { %568 = dma.hbm_to_vmem [thread:$0]  (!%p566_p0), %s218_s18, 128, %s220_s17, %s205_s19  }
  0x1a   : > { %p225_p3 = pnand %p541_p1, %p224_p2 }
  0x1b   : > { %s855_s2 = sand.u32 (!%p225_p3), 1, %s729_s21  }
  0x1c   : > { %228 = sbr.rel (%p225_p3) target bundleno = 357 (0x165), region = 40  ;;  %s542_s26 = sshll.u32 (!%p225_p3), %s855_s2, 3 }
  0x1d   : > { %s231_s28 = scalar_lea.sflag (!%p225_p3), [#allocation4], %s855_s2  ;;  %s234_s30 = scalar_lea.vmem (!%p225_p3), [#allocation3], %s542_s26 }
  0x21   : > { %716 = dma.done.wait (%p828_p8), %s231_s28, 128  }
  0x22   : > { %718 = vsyncadd (%p828_p8), %s231_s28, 4294967168  ;;  %v865_v0 = vld [vmem:[%s234_s30] sm:$0xff]  ;;  %vm276_vm0 = vcmask 1043456   ;;  %v265_v1 = vld [vmem:[%s929_s1] sm:$0x1]  ;;  %vm272_vm1 = vcmask 31744  }
  0x23   : > { %269 = vst [vmem:[#allocation1] ss:$2 sm:$0xff] %v865_v0  ;;  %s266_s6 = sld [smem:[#allocation2]]  ;;  %v368_v15 = vld [vmem:[%s932_s4] sm:$0xf]  ;;  %v747_v16 = vmov 0  }
  0x24   : > { %624 = vset.pattern.permute.xlu0 %v747_v16  ;;  %v367_v42 = vld [vmem:[%s931_s3] sm:$0xf]  ;;  %s560_s15 = sshll.u32 %s737_s23, 3  ;;  %s261_s19 = scalar_lea.vmem [#allocation6], %s542_s26 }
  0x25   : > { %371 = vperm.xlu0 %624, %v368_v15   ;;  %s445_s18 = scalar_lea.hbm %s933_s5, %s560_s15  ;;  %s447_s28 = sshll.u32 %s261_s19, 4  ;;  %s448_s28 = int_to_ptr.vmem [resolvable:$true] %s447_s28 }
  0x26   : > { %s449_s30 = sshll.u32 %s445_s18, 4  ;;  %s432_s23 = scalar_lea.sflag [#allocation5], %s855_s2  ;;  %s450_s30 = int_to_ptr.hbm [resolvable:$true] %s449_s30 }
  0x27   : > { %s677_s29 = sshra.s32 %s450_s30, 4  ;;  %s683_s26 = scalar_lea.hbm %s933_s5, 16  ;;  %s678_s29 = int_to_ptr.hbm [resolvable:$true] %s677_s29 }
  0x28   : > { %s679_s10 = scalar_lea.hbm %s678_s29, 8  ;;  %p684_p7 = scmp.lt.s32.totalorder %s678_s29, %s933_s5 }
  0x29   : > { %v267_v4 = vstv %s266_s6  ;;  %p680_p4 = scmp.ne.s32.totalorder %s678_s29, %s679_s10  ;;  %p685_p8 = scmp.lt.s32.totalorder %s683_s26, %s679_s10 }
  0x2a   : > { %v270_v2 = vld.sshfl [vmem:[#allocation1] sm:$0xff pattern:$0x75316420]  ;;  %v271_v3 = vld.sshfl [vmem:[#allocation1 + $0x8] sm:$0xff pattern:$0x75316420] }
  0x2b   : > { %544 = vmatpush.msk.msra.mxu0 %vm276_vm0, %v270_v2  ;;  %546 = vmatpush.msk.msra.mxu1 %vm276_vm0, %v271_v3  ;;  %p681_p5 = pnand %p680_p4, %p832_p9  ;;  %p686_p10 = por %p685_p8, %p684_p7 }
  0x2c   : > { %545 = vmatmul.msk.f32.vlgmr.msra.gmra.mxu0 %vm272_vm1, %v265_v1  ;;  %547 = vmatmul.msk.f32.vlgmr.msra.gmra.mxu1 %vm272_vm1, %v265_v1 }
  0x2d   : > { %p682_p6 = pneg %p681_p5 }
  0x2f   : > { %p687_p13 = pnand %p686_p10, %p682_p6 }
  0x97   : > { %v372_v45 = vpop.permute.xlu0 %371 }
  0xa9   : > { %v298_v5 = vpop.f32.mrf.mxu0  ;;  %v318_v6 = vpop.f32.mrf.mxu1 }
  0xaa   : > { %v299_v7 = vadd.f32 %v298_v5, %v267_v4  ;;  %v319_v8 = vadd.f32 %v318_v6, %v267_v4 }
  0xac   : > { %v548_v9 = vmul.f32 -1.442695, %v299_v7  ;;  %v549_v10 = vmul.f32 -1.442695, %v319_v8 }
  0xae   : > { %625 = vpow2.f32 %v548_v9 }
  0xaf   : > { %627 = vpow2.f32 %v549_v10 }
  0xb4   : > { %v626_v11 = vpop.eup %625 }
  0xb5   : > { %v628_v12 = vpop.eup %627  ;;  %v327_v13 = vadd.f32 1.0, %v626_v11 }
  0xb6   : > { %v328_v14 = vadd.f32 1.0, %v628_v12 }
  0xb7   : > { %629 = vrcp.f32 %v327_v13  ;;  %v340_v24 = vand.u32 2147483648, %v327_v13  ;;  %v338_v26 = vand.u32 2147483647, %v327_v13  ;;  %vm334_vm4 = vweird.f32 %v327_v13 }
  0xb8   : > { %631 = vrcp.f32 %v328_v14  ;;  %v355_v25 = vand.u32 2147483648, %v328_v14  ;;  %v353_v28 = vand.u32 2147483647, %v328_v14  ;;  %vm349_vm6 = vweird.f32 %v328_v14 }
  0xb9   : > { %v341_v32 = vor.u32 1.1754944e-38, %v340_v24  ;;  %vm339_vm8 = vcmp.eq.f32.partialorder %v338_v26, 8.507059e+37 }
  0xba   : > { %v356_v33 = vor.u32 1.1754944e-38, %v355_v25  ;;  %vm354_vm9 = vcmp.eq.f32.partialorder %v353_v28, 8.507059e+37 }
  0xbd   : > { %v630_v17 = vpop.eup %629 }
  0xbe   : > { %v632_v18 = vpop.eup %631  ;;  %v330_v19 = vmul.f32 %v630_v17, %v327_v13  ;;  %vm335_vm2 = vweird.f32 %v630_v17 }
  0xbf   : > { %v345_v20 = vmul.f32 %v632_v18, %v328_v14  ;;  %vm350_vm3 = vweird.f32 %v632_v18  ;;  %vm336_vm5 = vmor %vm334_vm4, %vm335_vm2 }
  0xc0   : > { %v331_v21 = vsub.f32 1.0, %v330_v19  ;;  %vm351_vm7 = vmor %vm349_vm6, %vm350_vm3 }
  0xc1   : > { %v346_v22 = vsub.f32 1.0, %v345_v20 }
  0xc2   : > { %v332_v23 = vmul.f32 %v630_v17, %v331_v21 }
  0xc3   : > { %v347_v27 = vmul.f32 %v632_v18, %v346_v22 }
  0xc4   : > { %v333_v29 = vadd.f32 %v630_v17, %v332_v23 }
  0xc5   : > { %v348_v30 = vadd.f32 %v632_v18, %v347_v27 }
  0xc6   : > { %v337_v31 = vsel %vm336_vm5, %v630_v17, %v333_v29 }
  0xc7   : > { %v352_v34 = vsel %vm351_vm7, %v632_v18, %v348_v30  ;;  %v342_v35 = vsel %vm339_vm8, %v341_v32, %v337_v31 }
  0xc8   : > { %v357_v36 = vsel %vm354_vm9, %v356_v33, %v352_v34  ;;  %v359_v38 = vperm.slane %v342_v35, 0 }
  0xc9   : > { %v360_v37 = vperm.slane %v357_v36, 0 }
  0xcb   : > { %v363_v39 = vrot.slane %v360_v37, 4 }
  0xcd   : > { %v364_v40 = vsel %vm276_vm0, %v359_v38, %v363_v39 }
  0xce   : > { %v366_v41 = vmul.f32 %v364_v40, %v865_v0 }
  0xd0   : > { %375 = vst [vmem:[#allocation1] ss:$2 sm:$0xff] %v366_v41 }
  0xd7   : > { %v376_v43 = vld.sshfl [vmem:[#allocation1] sm:$0xff pattern:$0x75316420]  ;;  %v377_v44 = vld.sshfl [vmem:[#allocation1 + $0x8] sm:$0xff pattern:$0x75316420] }
  0xd8   : > { %550 = vmatpush.msk.msra.mxu2 %vm276_vm0, %v376_v43  ;;  %552 = vmatpush.msk.msra.mxu3 %vm276_vm0, %v377_v44 }
  0xd9   : > { %551 = vmatmul.msk.f32.vlgmr.msra.gmra.mxu2 %vm272_vm1, %v367_v42  ;;  %553 = vmatmul.msk.f32.vlgmr.msra.gmra.mxu3 %vm272_vm1, %v367_v42 }
 0x15c   : > { %v402_v46 = vpop.f32.mrf.mxu2  ;;  %v422_v47 = vpop.f32.mrf.mxu3 }
 0x15d   : > { %v423_v48 = vadd.f32 %v422_v47, %v372_v45  ;;  %v403_v49 = vadd.f32 %v402_v46, %v372_v45 }
 0x15f   : > { %v427_v50 = vrot.slane %v423_v48, 4 }
 0x161   : > { %v428_v51 = vsel %vm276_vm0, %v403_v49, %v427_v50 }
 0x162   : > { %430 = vst [vmem:[%s261_s19] sm:$0xff] %v428_v51 }
 0x163   : > { %690 = shalt.err (!%p687_p13)
}
 0x164   : > { %563 = dma.vmem_to_hbm [thread:$0]  (%p832_p9), %s448_s28, 128, %s450_s30, %s432_s23  }
 0x165 PF: > { %s461_s2 = sand.u32 1, %s725_s20   ;;  %p570_p0 = pnand %p537_p12, %p839_p11 }
 0x166   : > { %s462_s14 = scalar_lea.sflag [#allocation5], %s461_s2 }
 0x167   : > { %p571_p1 = pneg %p570_p0 }
 0x169   : > { %720 = dma.done.wait (%p571_p1), %s462_s14, 128  }
 0x16a   : > { %722 = vsyncadd (%p571_p1), %s462_s14, 4294967168  ;;  %s22_s25 = sadd.s32 1, %s745_s25   ;;  %s938_s20 = smov %s729_s21 }
 0x16b   : > { %p19_p2 = scmp.ge.s32.totalorder %s22_s25, 4   ;;  %s939_s21 = smov %s733_s22 }
 0x16c   : > { %s940_s22 = smov %s837_s8  ;;  %s941_s23 = smov %s741_s24 }
 0x16d   : > { %s942_s24 = smov %s944_s27  ;;  %21 = sbr.rel (!%p19_p2) target bundleno = 8 (0x8), region = 85 }
 0x172   :  { %468 = vsyncpa [#allocation4], 1 }
 0x173   :  { %470 = vsyncpa [#allocation4 + $0x1], 1 }
 0x174   :  { %471 = vsyncpa [#allocation5], 1 }
 0x175   :  { %473 = vsyncpa [#allocation5 + $0x1], 1 }

</bundles_post_ra>
